<compile_context>
chip_gen: v7x
topology: tpu7x:2x2x1
jax: 0.10.0
libtpu: 0.0.40
codegen_flags: <defaults>
</compile_context>

<pallas_src>
import numpy as np
import jax
import jax.numpy as jnp
from jax.experimental import pallas as pl
from jax.experimental.pallas import tpu as pltpu


# ----------------------------------------------------------------------------
# Pallas kernel: one fused RevLayer
#   z   = x_a + F(x_b)        F = BN->ReLU->1x1->BN->ReLU->3x3x3->BN->ReLU->1x1
#   y_b = x_b + G(z)          (BN2/BN3 pre-folded into the convs; BN1 in-kernel)
# ----------------------------------------------------------------------------
def _make_layer_kernel(D, H, Hp):
    def _h_start(slot):
        st = slot * H
        if H % 8 == 0:
            st = pl.multiple_of(st, 8)
        return st

    def kernel(xb_ref, xa_ref,
               bn1F_ref, w1F_ref, b1F_ref, w3F_ref, b3F_ref, w2F_ref, b2F_ref,
               bn1G_ref, w1G_ref, b1G_ref, w3G_ref, b3G_ref, w2G_ref, b2G_ref,
               z_ref, yb_ref, uF_ref, uG_ref, xbb_ref):
        i = pl.program_id(1)
        s0 = jax.lax.rem(i, jnp.int32(3))        # slot of depth i      (uF, xb)
        s1 = jax.lax.rem(i + 2, jnp.int32(3))    # slot of depth i - 1
        s2 = jax.lax.rem(i + 1, jnp.int32(3))    # slot of depth i - 2

        @pl.when(i == 0)
        def _():
            # New batch element: rolling slabs must read as the zero 'same'
            # padding (depth -1 and the H-direction border rows); outputs
            # cleared so never-written steps hold defined data.
            uF_ref[...] = jnp.zeros(uF_ref.shape, uF_ref.dtype)
            uG_ref[...] = jnp.zeros(uG_ref.shape, uG_ref.dtype)
            z_ref[...] = jnp.zeros(z_ref.shape, z_ref.dtype)
            yb_ref[...] = jnp.zeros(yb_ref.shape, yb_ref.dtype)

        # ---- F stage 1: uF[i] = relu(conv1x1(relu(bn1F(x_b[i]))))  (bn2F folded)
        @pl.when(i < D)
        def _():
            xb = xb_ref[0, 0]                                     # (H, W*Cb)
            xbb_ref[pl.ds(_h_start(s0), H), :] = xb               # residual stash
            t = jnp.maximum(xb * bn1F_ref[0:1, :] + bn1F_ref[1:2, :], 0.0)
            t = jnp.dot(t, w1F_ref[...],
                        preferred_element_type=jnp.float32) + b1F_ref[...]
            # Interior rows only; rows 0 / Hp-1 stay zero (H 'same' padding).
            uF_ref[pl.ds(s0 * Hp + 1, H), :] = jnp.maximum(t, 0.0)

        @pl.when(i == D)
        def _():   # uF depth slab D is the zero 'same' padding below the volume
            uF_ref[pl.ds(s0 * Hp, Hp), :] = jnp.zeros(
                (Hp, uF_ref.shape[1]), jnp.float32)

        # ---- F stage 2 + G stage 1 (fused; z never leaves VMEM/registers):
        #   z[i-1]  = x_a[i-1] + conv1x1(relu(conv3x3x3(uF[i-2..i])))  (bn3F folded)
        #   uG[i-1] = relu(conv1x1(relu(bn1G(z[i-1]))))                (bn2G folded)
        @pl.when(jnp.logical_and(i >= 1, i <= D))
        def _():
            slots = (s2, s1, s0)                      # uF depths i-2, i-1, i
            acc = jnp.zeros((H, uF_ref.shape[1]), jnp.float32)
            for kd in range(3):
                slab = uF_ref[pl.ds(slots[kd] * Hp, Hp), :]       # (Hp, W*C)
                for kh in range(3):
                    acc = acc + jnp.dot(slab[kh:kh + H, :], w3F_ref[3 * kd + kh],
                                        preferred_element_type=jnp.float32)
            t = jnp.maximum(acc + b3F_ref[...], 0.0)
            z = (xa_ref[0, 0]
                 + jnp.dot(t, w2F_ref[...], preferred_element_type=jnp.float32)
                 + b2F_ref[...])
            z_ref[0, 0] = z
            g = jnp.maximum(z * bn1G_ref[0:1, :] + bn1G_ref[1:2, :], 0.0)
            g = jnp.dot(g, w1G_ref[...],
                        preferred_element_type=jnp.float32) + b1G_ref[...]
            uG_ref[pl.ds(s1 * Hp + 1, H), :] = jnp.maximum(g, 0.0)

        @pl.when(i == D + 1)
        def _():   # uG depth slab D is the zero 'same' padding below the volume
            uG_ref[pl.ds(s1 * Hp, Hp), :] = jnp.zeros(
                (Hp, uG_ref.shape[1]), jnp.float32)

        # ---- G stage 2: y_b[i-2] = x_b[i-2] + conv1x1(relu(conv3x3x3(uG)))
        @pl.when(i >= 2)
        def _():
            slots = (s0, s2, s1)                      # uG depths i-3, i-2, i-1
            acc = jnp.zeros((H, uG_ref.shape[1]), jnp.float32)
            for kd in range(3):
                slab = uG_ref[pl.ds(slots[kd] * Hp, Hp), :]
                for kh in range(3):
                    acc = acc + jnp.dot(slab[kh:kh + H, :], w3G_ref[3 * kd + kh],
                                        preferred_element_type=jnp.float32)
            t = jnp.maximum(acc + b3G_ref[...], 0.0)
            y = jnp.dot(t, w2G_ref[...],
                        preferred_element_type=jnp.float32) + b2G_ref[...]
            yb_ref[0, 0] = xbb_ref[pl.ds(_h_start(s2), H), :] + y

    return kernel


# ----------------------------------------------------------------------------
# Host-side parameter repack: fold BN2/BN3, build block-diag / block-banded
# weights for the W*C lane layout.
# ----------------------------------------------------------------------------
def _prep_branch_params(p, W):
    C = p["w1"].shape[0]
    s1, t1 = p["bn1"][0], p["bn1"][1]
    s2, t2 = p["bn2"][0], p["bn2"][1]
    s3, t3 = p["bn3"][0], p["bn3"][1]

    w1f = p["w1"] * s2[None, :]                         # bn2 -> conv1x1 #1
    b1f = p["b1"][0] * s2 + t2
    w3f = p["w3"].reshape(3, 3, 3, C, C) * s3[None, None, None, None, :]
    b3f = p["b3"][0] * s3 + t3                          # bn3 -> conv3x3x3

    eyeW = jnp.eye(W, dtype=jnp.float32)
    w1bd = jnp.kron(eyeW, w1f)                          # (W*C, W*C) block-diag
    w2bd = jnp.kron(eyeW, p["w2"])                      # (W*C, W*Co) block-diag

    # One block-banded (W*C, W*C) matrix per (kd, kh); the bands implement the
    # kw = -1/0/+1 taps and the W-direction zero 'same' padding.
    w3b = []
    for kd in range(3):
        for kh in range(3):
            m = jnp.zeros((W * C, W * C), jnp.float32)
            for kw in range(3):
                m = m + jnp.kron(jnp.eye(W, W, k=1 - kw, dtype=jnp.float32),
                                 w3f[kd, kh, kw])
            w3b.append(m)
    w3b = jnp.stack(w3b)                                # (9, W*C, W*C)

    return {
        "bn1t": jnp.stack([jnp.tile(s1, W), jnp.tile(t1, W)]),   # (2, W*C)
        "w1bd": w1bd,
        "b1t": jnp.tile(b1f, W)[None, :],
        "w3b": w3b,
        "b3t": jnp.tile(b3f, W)[None, :],
        "w2bd": w2bd,
        "b2t": jnp.tile(p["b2"][0], W)[None, :],
    }


# ----------------------------------------------------------------------------
# One fused RevLayer: (x_a, x_b) -> (z, y_b)   both packed as (N, D, H, W*C)
# ----------------------------------------------------------------------------
def _apply_layer(xa_p, xb_p, ppF, ppG):
    N, D, H, WCz = xa_p.shape
    WCb = xb_p.shape[-1]
    Hp = H + 2
    assert ppF["w2bd"].shape[1] == WCz and ppG["w2bd"].shape[1] == WCb
    WCf = ppF["w1bd"].shape[1]
    WCg = ppG["w1bd"].shape[1]

    kernel = _make_layer_kernel(D, H, Hp)

    def xb_map(n, i):
        return (n, jnp.minimum(i, D - 1), 0, 0)

    def xa_map(n, i):
        return (n, jnp.minimum(jnp.maximum(i - 1, 0), D - 1), 0, 0)

    def z_map(n, i):
        return (n, jnp.minimum(jnp.maximum(i - 1, 0), D - 1), 0, 0)

    def yb_map(n, i):
        return (n, jnp.minimum(jnp.maximum(i - 2, 0), D - 1), 0, 0)

    def const_spec(shape):
        nd = len(shape)
        return pl.BlockSpec(shape, lambda n, i: (0,) * nd)

    grid_spec = pltpu.PrefetchScalarGridSpec(
        num_scalar_prefetch=0,
        grid=(N, D + 2),
        in_specs=[
            pl.BlockSpec((1, 1, H, WCb), xb_map),
            pl.BlockSpec((1, 1, H, WCz), xa_map),
            const_spec(ppF["bn1t"].shape), const_spec(ppF["w1bd"].shape),
            const_spec(ppF["b1t"].shape), const_spec(ppF["w3b"].shape),
            const_spec(ppF["b3t"].shape), const_spec(ppF["w2bd"].shape),
            const_spec(ppF["b2t"].shape),
            const_spec(ppG["bn1t"].shape), const_spec(ppG["w1bd"].shape),
            const_spec(ppG["b1t"].shape), const_spec(ppG["w3b"].shape),
            const_spec(ppG["b3t"].shape), const_spec(ppG["w2bd"].shape),
            const_spec(ppG["b2t"].shape),
        ],
        out_specs=[
            pl.BlockSpec((1, 1, H, WCz), z_map),
            pl.BlockSpec((1, 1, H, WCb), yb_map),
        ],
        scratch_shapes=[
            pltpu.VMEM((3 * Hp, WCf), jnp.float32),   # rolling uF slabs
            pltpu.VMEM((3 * Hp, WCg), jnp.float32),   # rolling uG slabs
            pltpu.VMEM((3 * H, WCb), jnp.float32),    # rolling raw x_b residual
        ],
    )

    z, yb = pl.pallas_call(
        kernel,
        out_shape=(jax.ShapeDtypeStruct((N, D, H, WCz), jnp.float32),
                   jax.ShapeDtypeStruct((N, D, H, WCb), jnp.float32)),
        grid_spec=grid_spec,
        compiler_params=pltpu.CompilerParams(
            dimension_semantics=("parallel", "arbitrary"),
            vmem_limit_bytes=32 * 1024 * 1024),
    )(xb_p, xa_p,
      ppF["bn1t"], ppF["w1bd"], ppF["b1t"], ppF["w3b"], ppF["b3t"],
      ppF["w2bd"], ppF["b2t"],
      ppG["bn1t"], ppG["w1bd"], ppG["b1t"], ppG["w3b"], ppG["b3t"],
      ppG["w2bd"], ppG["b2t"])
    return z, yb


# ----------------------------------------------------------------------------
# RevBlock forward (Pallas version)
# ----------------------------------------------------------------------------
def rev_block_pallas(x_ncdhw, params):
    N, Cch, D, H, W = x_ncdhw.shape
    c1 = Cch // 2
    c2 = Cch - c1
    x = jnp.transpose(x_ncdhw, (0, 2, 3, 4, 1))       # NDHWC, once
    xa = x[..., :c1].reshape(N, D, H, W * c1)         # pack (W, C) onto lanes
    xb = x[..., c1:].reshape(N, D, H, W * c2)
    for lp in params:
        ppF = _prep_branch_params(lp["F"], W)
        ppG = _prep_branch_params(lp["G"], W)
        xa, xb = _apply_layer(xa, xb, ppF, ppG)       # (z, y_b), fused per layer
    y = jnp.concatenate([xa.reshape(N, D, H, W, c1),
                         xb.reshape(N, D, H, W, c2)], axis=-1)
    return jnp.transpose(y, (0, 4, 1, 2, 3))


# ----------------------------------------------------------------------------
# Deterministic parameter init (synthetic; mirrors the nn.Module __init__ shapes)
# ----------------------------------------------------------------------------
def _init_branch_params(key, c_in, c_out):
    ks = jax.random.split(key, 9)

    def bn(k, c):
        gamma = 1.0 + 0.1 * jax.random.normal(k, (c,))
        beta = 0.1 * jax.random.normal(jax.random.fold_in(k, 1), (c,))
        mean = 0.05 * jax.random.normal(jax.random.fold_in(k, 2), (c,))
        var = 1.0 + 0.1 * jnp.abs(jax.random.normal(jax.random.fold_in(k, 3), (c,)))
        scale = gamma / jnp.sqrt(var + 1e-5)
        shift = beta - mean * scale
        return jnp.stack([scale, shift]).astype(jnp.float32)

    p = {}
    p["bn1"] = bn(ks[0], c_in)
    p["w1"] = (jax.random.normal(ks[1], (c_in, c_in)) / np.sqrt(c_in)).astype(jnp.float32)
    p["b1"] = (0.1 * jax.random.normal(ks[2], (1, c_in))).astype(jnp.float32)
    p["bn2"] = bn(ks[3], c_in)
    p["w3"] = (jax.random.normal(ks[4], (27, c_in, c_in)) / np.sqrt(27 * c_in)).astype(jnp.float32)
    p["b3"] = (0.1 * jax.random.normal(ks[5], (1, c_in))).astype(jnp.float32)
    p["bn3"] = bn(ks[6], c_in)
    p["w2"] = (jax.random.normal(ks[7], (c_in, c_out)) / np.sqrt(c_in)).astype(jnp.float32)
    p["b2"] = (0.1 * jax.random.normal(ks[8], (1, c_out))).astype(jnp.float32)
    return p


# ----------------------------------------------------------------------------
# Pure-JAX reference (for correctness check)
# ----------------------------------------------------------------------------
def _ref_branch(x_res, x_in, p):
    hi = jax.lax.Precision.HIGHEST
    u = jnp.maximum(x_in * p["bn1"][0] + p["bn1"][1], 0.0)
    u = jnp.einsum("ndhwc,cf->ndhwf", u, p["w1"], precision=hi) + p["b1"][0]
    u = jnp.maximum(u * p["bn2"][0] + p["bn2"][1], 0.0)
    C = u.shape[-1]
    w3 = p["w3"].reshape(3, 3, 3, C, C)
    u = jax.lax.conv_general_dilated(
        u, w3, (1, 1, 1), "SAME",
        dimension_numbers=("NDHWC", "DHWIO", "NDHWC"),
        precision=hi) + p["b3"][0]
    u = jnp.maximum(u * p["bn3"][0] + p["bn3"][1], 0.0)
    u = jnp.einsum("ndhwc,cf->ndhwf", u, p["w2"], precision=hi) + p["b2"][0]
    return x_res + u


def rev_block_ref(x_ncdhw, params):
    x = jnp.transpose(x_ncdhw, (0, 2, 3, 4, 1))
    c1 = x.shape[-1] // 2
    for lp in params:
        x_a, x_b = x[..., :c1], x[..., c1:]
        z = _ref_branch(x_a, x_b, lp["F"])
        y_b = _ref_branch(x_b, z, lp["G"])
        x = jnp.concatenate([z, y_b], axis=-1)
    return jnp.transpose(x, (0, 4, 1, 2, 3))


# ----------------------------------------------------------------------------
if __name__ == "__main__":
    channels, n_revnet_layers = 8, 2
    N, D, H, W = 2, 8, 8, 8
    assert channels % 2 == 0

    key = jax.random.PRNGKey(0)
    kx, kp = jax.random.split(key)
    x = jax.random.normal(kx, (N, channels, D, H, W), jnp.float32)  # NCDHW

    c1 = channels // 2
    c2 = channels - c1
    params = []
    for i in range(n_revnet_layers):
        kF = jax.random.fold_in(kp, 2 * i)
        kG = jax.random.fold_in(kp, 2 * i + 1)
        params.append({
            "F": _init_branch_params(kF, c1, c1),   # res_1_in -> res_1_out
            "G": _init_branch_params(kG, c2, c2),   # res_2_in -> res_2_out
        })

    fwd = jax.jit(rev_block_pallas)
    out = jax.block_until_ready(fwd(x, params))
    assert out.shape == x.shape

    ref = rev_block_ref(x, params)
    err = float(jnp.max(jnp.abs(out - ref)))
    assert err < 2e-3, f"max abs err {err}"
    print("KERNEL_OK")
</pallas_src>

<mosaic_0001>
module attributes {stable_mosaic.version = 11 : i64} {
  func.func @kernel(%arg0: i32, %arg1: i32, %arg2: memref<1x1x8x32xf32, #tpu.memory_space<vmem>>, %arg3: memref<1x1x8x32xf32, #tpu.memory_space<vmem>>, %arg4: memref<2x32xf32, #tpu.memory_space<vmem>>, %arg5: memref<32x32xf32, #tpu.memory_space<vmem>>, %arg6: memref<1x32xf32, #tpu.memory_space<vmem>>, %arg7: memref<9x32x32xf32, #tpu.memory_space<vmem>>, %arg8: memref<1x32xf32, #tpu.memory_space<vmem>>, %arg9: memref<32x32xf32, #tpu.memory_space<vmem>>, %arg10: memref<1x32xf32, #tpu.memory_space<vmem>>, %arg11: memref<2x32xf32, #tpu.memory_space<vmem>>, %arg12: memref<32x32xf32, #tpu.memory_space<vmem>>, %arg13: memref<1x32xf32, #tpu.memory_space<vmem>>, %arg14: memref<9x32x32xf32, #tpu.memory_space<vmem>>, %arg15: memref<1x32xf32, #tpu.memory_space<vmem>>, %arg16: memref<32x32xf32, #tpu.memory_space<vmem>>, %arg17: memref<1x32xf32, #tpu.memory_space<vmem>>, %arg18: memref<1x1x8x32xf32, #tpu.memory_space<vmem>>, %arg19: memref<1x1x8x32xf32, #tpu.memory_space<vmem>>, %arg20: memref<30x32xf32, #tpu.memory_space<vmem>>, %arg21: memref<30x32xf32, #tpu.memory_space<vmem>>, %arg22: memref<24x32xf32, #tpu.memory_space<vmem>>) attributes {dimension_semantics = [#tpu.dimension_semantics<parallel>, #tpu.dimension_semantics<arbitrary>], iteration_bounds = array<i64: 2, 10>, scalar_prefetch = 0 : i64, scratch_operands = 3 : i64, tpu.core_type = #tpu.core_type<tc>, window_params = [{transform_indices = @transform_0, window_bounds = array<i64: 1, 1, 8, 32>}, {transform_indices = @transform_1, window_bounds = array<i64: 1, 1, 8, 32>}, {pipeline_mode = #tpu.pipeline_mode<synchronous>, transform_indices = @transform_2, window_bounds = array<i64: 2, 32>}, {pipeline_mode = #tpu.pipeline_mode<synchronous>, transform_indices = @transform_3, window_bounds = array<i64: 32, 32>}, {pipeline_mode = #tpu.pipeline_mode<synchronous>, transform_indices = @transform_4, window_bounds = array<i64: 1, 32>}, {pipeline_mode = #tpu.pipeline_mode<synchronous>, transform_indices = @transform_5, window_bounds = array<i64: 9, 32, 32>}, {pipeline_mode = #tpu.pipeline_mode<synchronous>, transform_indices = @transform_6, window_bounds = array<i64: 1, 32>}, {pipeline_mode = #tpu.pipeline_mode<synchronous>, transform_indices = @transform_7, window_bounds = array<i64: 32, 32>}, {pipeline_mode = #tpu.pipeline_mode<synchronous>, transform_indices = @transform_8, window_bounds = array<i64: 1, 32>}, {pipeline_mode = #tpu.pipeline_mode<synchronous>, transform_indices = @transform_9, window_bounds = array<i64: 2, 32>}, {pipeline_mode = #tpu.pipeline_mode<synchronous>, transform_indices = @transform_10, window_bounds = array<i64: 32, 32>}, {pipeline_mode = #tpu.pipeline_mode<synchronous>, transform_indices = @transform_11, window_bounds = array<i64: 1, 32>}, {pipeline_mode = #tpu.pipeline_mode<synchronous>, transform_indices = @transform_12, window_bounds = array<i64: 9, 32, 32>}, {pipeline_mode = #tpu.pipeline_mode<synchronous>, transform_indices = @transform_13, window_bounds = array<i64: 1, 32>}, {pipeline_mode = #tpu.pipeline_mode<synchronous>, transform_indices = @transform_14, window_bounds = array<i64: 32, 32>}, {pipeline_mode = #tpu.pipeline_mode<synchronous>, transform_indices = @transform_15, window_bounds = array<i64: 1, 32>}, {transform_indices = @transform_16, window_bounds = array<i64: 1, 1, 8, 32>}, {transform_indices = @transform_17, window_bounds = array<i64: 1, 1, 8, 32>}]} {
    %c3_i32 = arith.constant 3 : i32
    %0 = arith.remsi %arg1, %c3_i32 : i32
    %c2_i32 = arith.constant 2 : i32
    %1 = arith.addi %arg1, %c2_i32 : i32
    %c3_i32_0 = arith.constant 3 : i32
    %2 = arith.remsi %1, %c3_i32_0 : i32
    %c1_i32 = arith.constant 1 : i32
    %3 = arith.addi %arg1, %c1_i32 : i32
    %c3_i32_1 = arith.constant 3 : i32
    %4 = arith.remsi %3, %c3_i32_1 : i32
    %c0_i32 = arith.constant 0 : i32
    %5 = arith.cmpi eq, %arg1, %c0_i32 : i32
    %6 = arith.extui %5 : i1 to i32
    %c0_i32_2 = arith.constant 0 : i32
    %7 = arith.cmpi ne, %6, %c0_i32_2 : i32
    scf.if %7 {
      %cst = arith.constant 0.000000e+00 : f32
      %25 = vector.broadcast %cst : f32 to vector<30x32xf32>
      %c0 = arith.constant 0 : index
      %c0_12 = arith.constant 0 : index
      %26 = vector.load %arg20[%c0, %c0_12] : memref<30x32xf32, #tpu.memory_space<vmem>>, vector<30x32xf32>
      tpu.vector_store %arg20[%c0, %c0_12], %25 {strides = array<i32>} : memref<30x32xf32, #tpu.memory_space<vmem>>, vector<30x32xf32>,
      %cst_13 = arith.constant 0.000000e+00 : f32
      %27 = vector.broadcast %cst_13 : f32 to vector<30x32xf32>
      %c0_14 = arith.constant 0 : index
      %c0_15 = arith.constant 0 : index
      %28 = vector.load %arg21[%c0_14, %c0_15] : memref<30x32xf32, #tpu.memory_space<vmem>>, vector<30x32xf32>
      tpu.vector_store %arg21[%c0_14, %c0_15], %27 {strides = array<i32>} : memref<30x32xf32, #tpu.memory_space<vmem>>, vector<30x32xf32>,
      %cst_16 = arith.constant 0.000000e+00 : f32
      %29 = vector.broadcast %cst_16 : f32 to vector<1x1x8x32xf32>
      %c0_17 = arith.constant 0 : index
      %c0_18 = arith.constant 0 : index
      %c0_19 = arith.constant 0 : index
      %c0_20 = arith.constant 0 : index
      %30 = vector.load %arg18[%c0_17, %c0_18, %c0_19, %c0_20] : memref<1x1x8x32xf32, #tpu.memory_space<vmem>>, vector<1x1x8x32xf32>
      tpu.vector_store %arg18[%c0_17, %c0_18, %c0_19, %c0_20], %29 {strides = array<i32>} : memref<1x1x8x32xf32, #tpu.memory_space<vmem>>, vector<1x1x8x32xf32>,
      %cst_21 = arith.constant 0.000000e+00 : f32
      %31 = vector.broadcast %cst_21 : f32 to vector<1x1x8x32xf32>
      %c0_22 = arith.constant 0 : index
      %c0_23 = arith.constant 0 : index
      %c0_24 = arith.constant 0 : index
      %c0_25 = arith.constant 0 : index
      %32 = vector.load %arg19[%c0_22, %c0_23, %c0_24, %c0_25] : memref<1x1x8x32xf32, #tpu.memory_space<vmem>>, vector<1x1x8x32xf32>
      tpu.vector_store %arg19[%c0_22, %c0_23, %c0_24, %c0_25], %31 {strides = array<i32>} : memref<1x1x8x32xf32, #tpu.memory_space<vmem>>, vector<1x1x8x32xf32>,
    } else {
    }
    %c8_i32 = arith.constant 8 : i32
    %8 = arith.cmpi slt, %arg1, %c8_i32 : i32
    %9 = arith.extui %8 : i1 to i32
    %c0_i32_3 = arith.constant 0 : i32
    %10 = arith.cmpi ne, %9, %c0_i32_3 : i32
    scf.if %10 {
      %c0 = arith.constant 0 : index
      %c0_12 = arith.constant 0 : index
      %c0_13 = arith.constant 0 : index
      %c0_14 = arith.constant 0 : index
      %25 = vector.load %arg2[%c0, %c0_12, %c0_13, %c0_14] : memref<1x1x8x32xf32, #tpu.memory_space<vmem>>, vector<1x1x8x32xf32>
      %26 = vector.shape_cast %25 : vector<1x1x8x32xf32> to vector<8x32xf32>
      %c8_i32_15 = arith.constant 8 : i32
      %27 = arith.muli %0, %c8_i32_15 : i32
      %28 = tpu.assume_multiple %27, 8 : i32
      %29 = arith.index_cast %28 : i32 to index
      %c0_16 = arith.constant 0 : index
      %30 = vector.load %arg22[%29, %c0_16] : memref<24x32xf32, #tpu.memory_space<vmem>>, vector<8x32xf32>
      tpu.vector_store %arg22[%29, %c0_16], %26 {strides = array<i32>} : memref<24x32xf32, #tpu.memory_space<vmem>>, vector<8x32xf32>,
      %c0_17 = arith.constant 0 : index
      %c0_18 = arith.constant 0 : index
      %31 = vector.load %arg4[%c0_17, %c0_18] : memref<2x32xf32, #tpu.memory_space<vmem>>, vector<1x32xf32>
      %32 = vector.broadcast %31 : vector<1x32xf32> to vector<8x32xf32>
      %33 = arith.mulf %26, %32 : vector<8x32xf32>
      %c1 = arith.constant 1 : index
      %c0_19 = arith.constant 0 : index
      %34 = vector.load %arg4[%c1, %c0_19] : memref<2x32xf32, #tpu.memory_space<vmem>>, vector<1x32xf32>
      %35 = vector.broadcast %34 : vector<1x32xf32> to vector<8x32xf32>
      %36 = arith.addf %33, %35 : vector<8x32xf32>
      %cst = arith.constant 0.000000e+00 : f32
      %37 = vector.broadcast %cst : f32 to vector<8x32xf32>
      %38 = arith.maximumf %36, %37 : vector<8x32xf32>
      %c0_20 = arith.constant 0 : index
      %c0_21 = arith.constant 0 : index
      %39 = vector.load %arg5[%c0_20, %c0_21] : memref<32x32xf32, #tpu.memory_space<vmem>>, vector<32x32xf32>
      %cst_22 = arith.constant dense<0.000000e+00> : vector<8x32xf32>
      %40 = tpu.matmul %38, %39, %cst_22 {dimension_numbers = #tpu.dot_dimension_numbers<[1], [0], [0], [1], [0, 0, 1, 1], [], []>} : vector<8x32xf32>, vector<32x32xf32>, vector<8x32xf32> -> vector<8x32xf32>
      %c0_23 = arith.constant 0 : index
      %c0_24 = arith.constant 0 : index
      %41 = vector.load %arg6[%c0_23, %c0_24] : memref<1x32xf32, #tpu.memory_space<vmem>>, vector<1x32xf32>
      %42 = vector.broadcast %41 : vector<1x32xf32> to vector<8x32xf32>
      %43 = arith.addf %40, %42 : vector<8x32xf32>
      %cst_25 = arith.constant 0.000000e+00 : f32
      %44 = vector.broadcast %cst_25 : f32 to vector<8x32xf32>
      %45 = arith.maximumf %43, %44 : vector<8x32xf32>
      %c10_i32 = arith.constant 10 : i32
      %46 = arith.muli %0, %c10_i32 : i32
      %c1_i32_26 = arith.constant 1 : i32
      %47 = arith.addi %46, %c1_i32_26 : i32
      %48 = arith.index_cast %47 : i32 to index
      %c0_27 = arith.constant 0 : index
      %49 = vector.load %arg20[%48, %c0_27] : memref<30x32xf32, #tpu.memory_space<vmem>>, vector<8x32xf32>
      tpu.vector_store %arg20[%48, %c0_27], %45 {strides = array<i32>} : memref<30x32xf32, #tpu.memory_space<vmem>>, vector<8x32xf32>,
    } else {
    }
    %c8_i32_4 = arith.constant 8 : i32
    %11 = arith.cmpi eq, %arg1, %c8_i32_4 : i32
    %12 = arith.extui %11 : i1 to i32
    %c0_i32_5 = arith.constant 0 : i32
    %13 = arith.cmpi ne, %12, %c0_i32_5 : i32
    scf.if %13 {
      %cst = arith.constant 0.000000e+00 : f32
      %25 = vector.broadcast %cst : f32 to vector<10x32xf32>
      %c10_i32 = arith.constant 10 : i32
      %26 = arith.muli %0, %c10_i32 : i32
      %27 = arith.index_cast %26 : i32 to index
      %c0 = arith.constant 0 : index
      %28 = vector.load %arg20[%27, %c0] : memref<30x32xf32, #tpu.memory_space<vmem>>, vector<10x32xf32>
      tpu.vector_store %arg20[%27, %c0], %25 {strides = array<i32>} : memref<30x32xf32, #tpu.memory_space<vmem>>, vector<10x32xf32>,
    } else {
    }
    %c1_i32_6 = arith.constant 1 : i32
    %14 = arith.cmpi sge, %arg1, %c1_i32_6 : i32
    %c8_i32_7 = arith.constant 8 : i32
    %15 = arith.cmpi sle, %arg1, %c8_i32_7 : i32
    %16 = arith.andi %14, %15 : i1
    %17 = arith.extui %16 : i1 to i32
    %c0_i32_8 = arith.constant 0 : i32
    %18 = arith.cmpi ne, %17, %c0_i32_8 : i32
    scf.if %18 {
      %cst = arith.constant 0.000000e+00 : f32
      %25 = vector.broadcast %cst : f32 to vector<8x32xf32>
      %c10_i32 = arith.constant 10 : i32
      %26 = arith.muli %4, %c10_i32 : i32
      %27 = arith.index_cast %26 : i32 to index
      %c0 = arith.constant 0 : index
      %28 = vector.load %arg20[%27, %c0] : memref<30x32xf32, #tpu.memory_space<vmem>>, vector<10x32xf32>
      %29 = vector.extract_strided_slice %28 {offsets = [0, 0], sizes = [8, 32], strides = [1, 1]} : vector<10x32xf32> to vector<8x32xf32>
      %c0_12 = arith.constant 0 : index
      %c0_13 = arith.constant 0 : index
      %c0_14 = arith.constant 0 : index
      %30 = vector.load %arg7[%c0_12, %c0_13, %c0_14] : memref<9x32x32xf32, #tpu.memory_space<vmem>>, vector<1x32x32xf32>
      %31 = vector.shape_cast %30 : vector<1x32x32xf32> to vector<32x32xf32>
      %cst_15 = arith.constant dense<0.000000e+00> : vector<8x32xf32>
      %32 = tpu.matmul %29, %31, %cst_15 {dimension_numbers = #tpu.dot_dimension_numbers<[1], [0], [0], [1], [0, 0, 1, 1], [], []>} : vector<8x32xf32>, vector<32x32xf32>, vector<8x32xf32> -> vector<8x32xf32>
      %33 = arith.addf %25, %32 : vector<8x32xf32>
      %34 = vector.extract_strided_slice %28 {offsets = [1, 0], sizes = [8, 32], strides = [1, 1]} : vector<10x32xf32> to vector<8x32xf32>
      %c1 = arith.constant 1 : index
      %c0_16 = arith.constant 0 : index
      %c0_17 = arith.constant 0 : index
      %35 = vector.load %arg7[%c1, %c0_16, %c0_17] : memref<9x32x32xf32, #tpu.memory_space<vmem>>, vector<1x32x32xf32>
      %36 = vector.shape_cast %35 : vector<1x32x32xf32> to vector<32x32xf32>
      %cst_18 = arith.constant dense<0.000000e+00> : vector<8x32xf32>
      %37 = tpu.matmul %34, %36, %cst_18 {dimension_numbers = #tpu.dot_dimension_numbers<[1], [0], [0], [1], [0, 0, 1, 1], [], []>} : vector<8x32xf32>, vector<32x32xf32>, vector<8x32xf32> -> vector<8x32xf32>
      %38 = arith.addf %33, %37 : vector<8x32xf32>
      %39 = vector.extract_strided_slice %28 {offsets = [2, 0], sizes = [8, 32], strides = [1, 1]} : vector<10x32xf32> to vector<8x32xf32>
      %c2 = arith.constant 2 : index
      %c0_19 = arith.constant 0 : index
      %c0_20 = arith.constant 0 : index
      %40 = vector.load %arg7[%c2, %c0_19, %c0_20] : memref<9x32x32xf32, #tpu.memory_space<vmem>>, vector<1x32x32xf32>
      %41 = vector.shape_cast %40 : vector<1x32x32xf32> to vector<32x32xf32>
      %cst_21 = arith.constant dense<0.000000e+00> : vector<8x32xf32>
      %42 = tpu.matmul %39, %41, %cst_21 {dimension_numbers = #tpu.dot_dimension_numbers<[1], [0], [0], [1], [0, 0, 1, 1], [], []>} : vector<8x32xf32>, vector<32x32xf32>, vector<8x32xf32> -> vector<8x32xf32>
      %43 = arith.addf %38, %42 : vector<8x32xf32>
      %c10_i32_22 = arith.constant 10 : i32
      %44 = arith.muli %2, %c10_i32_22 : i32
      %45 = arith.index_cast %44 : i32 to index
      %c0_23 = arith.constant 0 : index
      %46 = vector.load %arg20[%45, %c0_23] : memref<30x32xf32, #tpu.memory_space<vmem>>, vector<10x32xf32>
      %47 = vector.extract_strided_slice %46 {offsets = [0, 0], sizes = [8, 32], strides = [1, 1]} : vector<10x32xf32> to vector<8x32xf32>
      %c3 = arith.constant 3 : index
      %c0_24 = arith.constant 0 : index
      %c0_25 = arith.constant 0 : index
      %48 = vector.load %arg7[%c3, %c0_24, %c0_25] : memref<9x32x32xf32, #tpu.memory_space<vmem>>, vector<1x32x32xf32>
      %49 = vector.shape_cast %48 : vector<1x32x32xf32> to vector<32x32xf32>
      %cst_26 = arith.constant dense<0.000000e+00> : vector<8x32xf32>
      %50 = tpu.matmul %47, %49, %cst_26 {dimension_numbers = #tpu.dot_dimension_numbers<[1], [0], [0], [1], [0, 0, 1, 1], [], []>} : vector<8x32xf32>, vector<32x32xf32>, vector<8x32xf32> -> vector<8x32xf32>
      %51 = arith.addf %43, %50 : vector<8x32xf32>
      %52 = vector.extract_strided_slice %46 {offsets = [1, 0], sizes = [8, 32], strides = [1, 1]} : vector<10x32xf32> to vector<8x32xf32>
      %c4 = arith.constant 4 : index
      %c0_27 = arith.constant 0 : index
      %c0_28 = arith.constant 0 : index
      %53 = vector.load %arg7[%c4, %c0_27, %c0_28] : memref<9x32x32xf32, #tpu.memory_space<vmem>>, vector<1x32x32xf32>
      %54 = vector.shape_cast %53 : vector<1x32x32xf32> to vector<32x32xf32>
      %cst_29 = arith.constant dense<0.000000e+00> : vector<8x32xf32>
      %55 = tpu.matmul %52, %54, %cst_29 {dimension_numbers = #tpu.dot_dimension_numbers<[1], [0], [0], [1], [0, 0, 1, 1], [], []>} : vector<8x32xf32>, vector<32x32xf32>, vector<8x32xf32> -> vector<8x32xf32>
      %56 = arith.addf %51, %55 : vector<8x32xf32>
      %57 = vector.extract_strided_slice %46 {offsets = [2, 0], sizes = [8, 32], strides = [1, 1]} : vector<10x32xf32> to vector<8x32xf32>
      %c5 = arith.constant 5 : index
      %c0_30 = arith.constant 0 : index
      %c0_31 = arith.constant 0 : index
      %58 = vector.load %arg7[%c5, %c0_30, %c0_31] : memref<9x32x32xf32, #tpu.memory_space<vmem>>, vector<1x32x32xf32>
      %59 = vector.shape_cast %58 : vector<1x32x32xf32> to vector<32x32xf32>
      %cst_32 = arith.constant dense<0.000000e+00> : vector<8x32xf32>
      %60 = tpu.matmul %57, %59, %cst_32 {dimension_numbers = #tpu.dot_dimension_numbers<[1], [0], [0], [1], [0, 0, 1, 1], [], []>} : vector<8x32xf32>, vector<32x32xf32>, vector<8x32xf32> -> vector<8x32xf32>
      %61 = arith.addf %56, %60 : vector<8x32xf32>
      %c10_i32_33 = arith.constant 10 : i32
      %62 = arith.muli %0, %c10_i32_33 : i32
      %63 = arith.index_cast %62 : i32 to index
      %c0_34 = arith.constant 0 : index
      %64 = vector.load %arg20[%63, %c0_34] : memref<30x32xf32, #tpu.memory_space<vmem>>, vector<10x32xf32>
      %65 = vector.extract_strided_slice %64 {offsets = [0, 0], sizes = [8, 32], strides = [1, 1]} : vector<10x32xf32> to vector<8x32xf32>
      %c6 = arith.constant 6 : index
      %c0_35 = arith.constant 0 : index
      %c0_36 = arith.constant 0 : index
      %66 = vector.load %arg7[%c6, %c0_35, %c0_36] : memref<9x32x32xf32, #tpu.memory_space<vmem>>, vector<1x32x32xf32>
      %67 = vector.shape_cast %66 : vector<1x32x32xf32> to vector<32x32xf32>
      %cst_37 = arith.constant dense<0.000000e+00> : vector<8x32xf32>
      %68 = tpu.matmul %65, %67, %cst_37 {dimension_numbers = #tpu.dot_dimension_numbers<[1], [0], [0], [1], [0, 0, 1, 1], [], []>} : vector<8x32xf32>, vector<32x32xf32>, vector<8x32xf32> -> vector<8x32xf32>
      %69 = arith.addf %61, %68 : vector<8x32xf32>
      %70 = vector.extract_strided_slice %64 {offsets = [1, 0], sizes = [8, 32], strides = [1, 1]} : vector<10x32xf32> to vector<8x32xf32>
      %c7 = arith.constant 7 : index
      %c0_38 = arith.constant 0 : index
      %c0_39 = arith.constant 0 : index
      %71 = vector.load %arg7[%c7, %c0_38, %c0_39] : memref<9x32x32xf32, #tpu.memory_space<vmem>>, vector<1x32x32xf32>
      %72 = vector.shape_cast %71 : vector<1x32x32xf32> to vector<32x32xf32>
      %cst_40 = arith.constant dense<0.000000e+00> : vector<8x32xf32>
      %73 = tpu.matmul %70, %72, %cst_40 {dimension_numbers = #tpu.dot_dimension_numbers<[1], [0], [0], [1], [0, 0, 1, 1], [], []>} : vector<8x32xf32>, vector<32x32xf32>, vector<8x32xf32> -> vector<8x32xf32>
      %74 = arith.addf %69, %73 : vector<8x32xf32>
      %75 = vector.extract_strided_slice %64 {offsets = [2, 0], sizes = [8, 32], strides = [1, 1]} : vector<10x32xf32> to vector<8x32xf32>
      %c8 = arith.constant 8 : index
      %c0_41 = arith.constant 0 : index
      %c0_42 = arith.constant 0 : index
      %76 = vector.load %arg7[%c8, %c0_41, %c0_42] : memref<9x32x32xf32, #tpu.memory_space<vmem>>, vector<1x32x32xf32>
      %77 = vector.shape_cast %76 : vector<1x32x32xf32> to vector<32x32xf32>
      %cst_43 = arith.constant dense<0.000000e+00> : vector<8x32xf32>
      %78 = tpu.matmul %75, %77, %cst_43 {dimension_numbers = #tpu.dot_dimension_numbers<[1], [0], [0], [1], [0, 0, 1, 1], [], []>} : vector<8x32xf32>, vector<32x32xf32>, vector<8x32xf32> -> vector<8x32xf32>
      %79 = arith.addf %74, %78 : vector<8x32xf32>
      %c0_44 = arith.constant 0 : index
      %c0_45 = arith.constant 0 : index
      %80 = vector.load %arg8[%c0_44, %c0_45] : memref<1x32xf32, #tpu.memory_space<vmem>>, vector<1x32xf32>
      %81 = vector.broadcast %80 : vector<1x32xf32> to vector<8x32xf32>
      %82 = arith.addf %79, %81 : vector<8x32xf32>
      %cst_46 = arith.constant 0.000000e+00 : f32
      %83 = vector.broadcast %cst_46 : f32 to vector<8x32xf32>
      %84 = arith.maximumf %82, %83 : vector<8x32xf32>
      %c0_47 = arith.constant 0 : index
      %c0_48 = arith.constant 0 : index
      %c0_49 = arith.constant 0 : index
      %c0_50 = arith.constant 0 : index
      %85 = vector.load %arg3[%c0_47, %c0_48, %c0_49, %c0_50] : memref<1x1x8x32xf32, #tpu.memory_space<vmem>>, vector<1x1x8x32xf32>
      %86 = vector.shape_cast %85 : vector<1x1x8x32xf32> to vector<8x32xf32>
      %c0_51 = arith.constant 0 : index
      %c0_52 = arith.constant 0 : index
      %87 = vector.load %arg9[%c0_51, %c0_52] : memref<32x32xf32, #tpu.memory_space<vmem>>, vector<32x32xf32>
      %cst_53 = arith.constant dense<0.000000e+00> : vector<8x32xf32>
      %88 = tpu.matmul %84, %87, %cst_53 {dimension_numbers = #tpu.dot_dimension_numbers<[1], [0], [0], [1], [0, 0, 1, 1], [], []>} : vector<8x32xf32>, vector<32x32xf32>, vector<8x32xf32> -> vector<8x32xf32>
      %89 = arith.addf %86, %88 : vector<8x32xf32>
      %c0_54 = arith.constant 0 : index
      %c0_55 = arith.constant 0 : index
      %90 = vector.load %arg10[%c0_54, %c0_55] : memref<1x32xf32, #tpu.memory_space<vmem>>, vector<1x32xf32>
      %91 = vector.broadcast %90 : vector<1x32xf32> to vector<8x32xf32>
      %92 = arith.addf %89, %91 : vector<8x32xf32>
      %c0_56 = arith.constant 0 : index
      %c0_57 = arith.constant 0 : index
      %c0_58 = arith.constant 0 : index
      %c0_59 = arith.constant 0 : index
      %93 = vector.load %arg18[%c0_56, %c0_57, %c0_58, %c0_59] : memref<1x1x8x32xf32, #tpu.memory_space<vmem>>, vector<1x1x8x32xf32>
      %94 = vector.shape_cast %93 : vector<1x1x8x32xf32> to vector<8x32xf32>
      %95 = vector.shape_cast %92 : vector<8x32xf32> to vector<1x1x8x32xf32>
      tpu.vector_store %arg18[%c0_56, %c0_57, %c0_58, %c0_59], %95 {strides = array<i32>} : memref<1x1x8x32xf32, #tpu.memory_space<vmem>>, vector<1x1x8x32xf32>,
      %c0_60 = arith.constant 0 : index
      %c0_61 = arith.constant 0 : index
      %96 = vector.load %arg11[%c0_60, %c0_61] : memref<2x32xf32, #tpu.memory_space<vmem>>, vector<1x32xf32>
      %97 = vector.broadcast %96 : vector<1x32xf32> to vector<8x32xf32>
      %98 = arith.mulf %92, %97 : vector<8x32xf32>
      %c1_62 = arith.constant 1 : index
      %c0_63 = arith.constant 0 : index
      %99 = vector.load %arg11[%c1_62, %c0_63] : memref<2x32xf32, #tpu.memory_space<vmem>>, vector<1x32xf32>
      %100 = vector.broadcast %99 : vector<1x32xf32> to vector<8x32xf32>
      %101 = arith.addf %98, %100 : vector<8x32xf32>
      %cst_64 = arith.constant 0.000000e+00 : f32
      %102 = vector.broadcast %cst_64 : f32 to vector<8x32xf32>
      %103 = arith.maximumf %101, %102 : vector<8x32xf32>
      %c0_65 = arith.constant 0 : index
      %c0_66 = arith.constant 0 : index
      %104 = vector.load %arg12[%c0_65, %c0_66] : memref<32x32xf32, #tpu.memory_space<vmem>>, vector<32x32xf32>
      %cst_67 = arith.constant dense<0.000000e+00> : vector<8x32xf32>
      %105 = tpu.matmul %103, %104, %cst_67 {dimension_numbers = #tpu.dot_dimension_numbers<[1], [0], [0], [1], [0, 0, 1, 1], [], []>} : vector<8x32xf32>, vector<32x32xf32>, vector<8x32xf32> -> vector<8x32xf32>
      %c0_68 = arith.constant 0 : index
      %c0_69 = arith.constant 0 : index
      %106 = vector.load %arg13[%c0_68, %c0_69] : memref<1x32xf32, #tpu.memory_space<vmem>>, vector<1x32xf32>
      %107 = vector.broadcast %106 : vector<1x32xf32> to vector<8x32xf32>
      %108 = arith.addf %105, %107 : vector<8x32xf32>
      %cst_70 = arith.constant 0.000000e+00 : f32
      %109 = vector.broadcast %cst_70 : f32 to vector<8x32xf32>
      %110 = arith.maximumf %108, %109 : vector<8x32xf32>
      %c10_i32_71 = arith.constant 10 : i32
      %111 = arith.muli %2, %c10_i32_71 : i32
      %c1_i32_72 = arith.constant 1 : i32
      %112 = arith.addi %111, %c1_i32_72 : i32
      %113 = arith.index_cast %112 : i32 to index
      %c0_73 = arith.constant 0 : index
      %114 = vector.load %arg21[%113, %c0_73] : memref<30x32xf32, #tpu.memory_space<vmem>>, vector<8x32xf32>
      tpu.vector_store %arg21[%113, %c0_73], %110 {strides = array<i32>} : memref<30x32xf32, #tpu.memory_space<vmem>>, vector<8x32xf32>,
    } else {
    }
    %c9_i32 = arith.constant 9 : i32
    %19 = arith.cmpi eq, %arg1, %c9_i32 : i32
    %20 = arith.extui %19 : i1 to i32
    %c0_i32_9 = arith.constant 0 : i32
    %21 = arith.cmpi ne, %20, %c0_i32_9 : i32
    scf.if %21 {
      %cst = arith.constant 0.000000e+00 : f32
      %25 = vector.broadcast %cst : f32 to vector<10x32xf32>
      %c10_i32 = arith.constant 10 : i32
      %26 = arith.muli %2, %c10_i32 : i32
      %27 = arith.index_cast %26 : i32 to index
      %c0 = arith.constant 0 : index
      %28 = vector.load %arg21[%27, %c0] : memref<30x32xf32, #tpu.memory_space<vmem>>, vector<10x32xf32>
      tpu.vector_store %arg21[%27, %c0], %25 {strides = array<i32>} : memref<30x32xf32, #tpu.memory_space<vmem>>, vector<10x32xf32>,
    } else {
    }
    %c2_i32_10 = arith.constant 2 : i32
    %22 = arith.cmpi sge, %arg1, %c2_i32_10 : i32
    %23 = arith.extui %22 : i1 to i32
    %c0_i32_11 = arith.constant 0 : i32
    %24 = arith.cmpi ne, %23, %c0_i32_11 : i32
    scf.if %24 {
      %cst = arith.constant 0.000000e+00 : f32
      %25 = vector.broadcast %cst : f32 to vector<8x32xf32>
      %c10_i32 = arith.constant 10 : i32
      %26 = arith.muli %0, %c10_i32 : i32
      %27 = arith.index_cast %26 : i32 to index
      %c0 = arith.constant 0 : index
      %28 = vector.load %arg21[%27, %c0] : memref<30x32xf32, #tpu.memory_space<vmem>>, vector<10x32xf32>
      %29 = vector.extract_strided_slice %28 {offsets = [0, 0], sizes = [8, 32], strides = [1, 1]} : vector<10x32xf32> to vector<8x32xf32>
      %c0_12 = arith.constant 0 : index
      %c0_13 = arith.constant 0 : index
      %c0_14 = arith.constant 0 : index
      %30 = vector.load %arg14[%c0_12, %c0_13, %c0_14] : memref<9x32x32xf32, #tpu.memory_space<vmem>>, vector<1x32x32xf32>
      %31 = vector.shape_cast %30 : vector<1x32x32xf32> to vector<32x32xf32>
      %cst_15 = arith.constant dense<0.000000e+00> : vector<8x32xf32>
      %32 = tpu.matmul %29, %31, %cst_15 {dimension_numbers = #tpu.dot_dimension_numbers<[1], [0], [0], [1], [0, 0, 1, 1], [], []>} : vector<8x32xf32>, vector<32x32xf32>, vector<8x32xf32> -> vector<8x32xf32>
      %33 = arith.addf %25, %32 : vector<8x32xf32>
      %34 = vector.extract_strided_slice %28 {offsets = [1, 0], sizes = [8, 32], strides = [1, 1]} : vector<10x32xf32> to vector<8x32xf32>
      %c1 = arith.constant 1 : index
      %c0_16 = arith.constant 0 : index
      %c0_17 = arith.constant 0 : index
      %35 = vector.load %arg14[%c1, %c0_16, %c0_17] : memref<9x32x32xf32, #tpu.memory_space<vmem>>, vector<1x32x32xf32>
      %36 = vector.shape_cast %35 : vector<1x32x32xf32> to vector<32x32xf32>
      %cst_18 = arith.constant dense<0.000000e+00> : vector<8x32xf32>
      %37 = tpu.matmul %34, %36, %cst_18 {dimension_numbers = #tpu.dot_dimension_numbers<[1], [0], [0], [1], [0, 0, 1, 1], [], []>} : vector<8x32xf32>, vector<32x32xf32>, vector<8x32xf32> -> vector<8x32xf32>
      %38 = arith.addf %33, %37 : vector<8x32xf32>
      %39 = vector.extract_strided_slice %28 {offsets = [2, 0], sizes = [8, 32], strides = [1, 1]} : vector<10x32xf32> to vector<8x32xf32>
      %c2 = arith.constant 2 : index
      %c0_19 = arith.constant 0 : index
      %c0_20 = arith.constant 0 : index
      %40 = vector.load %arg14[%c2, %c0_19, %c0_20] : memref<9x32x32xf32, #tpu.memory_space<vmem>>, vector<1x32x32xf32>
      %41 = vector.shape_cast %40 : vector<1x32x32xf32> to vector<32x32xf32>
      %cst_21 = arith.constant dense<0.000000e+00> : vector<8x32xf32>
      %42 = tpu.matmul %39, %41, %cst_21 {dimension_numbers = #tpu.dot_dimension_numbers<[1], [0], [0], [1], [0, 0, 1, 1], [], []>} : vector<8x32xf32>, vector<32x32xf32>, vector<8x32xf32> -> vector<8x32xf32>
      %43 = arith.addf %38, %42 : vector<8x32xf32>
      %c10_i32_22 = arith.constant 10 : i32
      %44 = arith.muli %4, %c10_i32_22 : i32
      %45 = arith.index_cast %44 : i32 to index
      %c0_23 = arith.constant 0 : index
      %46 = vector.load %arg21[%45, %c0_23] : memref<30x32xf32, #tpu.memory_space<vmem>>, vector<10x32xf32>
      %47 = vector.extract_strided_slice %46 {offsets = [0, 0], sizes = [8, 32], strides = [1, 1]} : vector<10x32xf32> to vector<8x32xf32>
      %c3 = arith.constant 3 : index
      %c0_24 = arith.constant 0 : index
      %c0_25 = arith.constant 0 : index
      %48 = vector.load %arg14[%c3, %c0_24, %c0_25] : memref<9x32x32xf32, #tpu.memory_space<vmem>>, vector<1x32x32xf32>
      %49 = vector.shape_cast %48 : vector<1x32x32xf32> to vector<32x32xf32>
      %cst_26 = arith.constant dense<0.000000e+00> : vector<8x32xf32>
      %50 = tpu.matmul %47, %49, %cst_26 {dimension_numbers = #tpu.dot_dimension_numbers<[1], [0], [0], [1], [0, 0, 1, 1], [], []>} : vector<8x32xf32>, vector<32x32xf32>, vector<8x32xf32> -> vector<8x32xf32>
      %51 = arith.addf %43, %50 : vector<8x32xf32>
      %52 = vector.extract_strided_slice %46 {offsets = [1, 0], sizes = [8, 32], strides = [1, 1]} : vector<10x32xf32> to vector<8x32xf32>
      %c4 = arith.constant 4 : index
      %c0_27 = arith.constant 0 : index
      %c0_28 = arith.constant 0 : index
      %53 = vector.load %arg14[%c4, %c0_27, %c0_28] : memref<9x32x32xf32, #tpu.memory_space<vmem>>, vector<1x32x32xf32>
      %54 = vector.shape_cast %53 : vector<1x32x32xf32> to vector<32x32xf32>
      %cst_29 = arith.constant dense<0.000000e+00> : vector<8x32xf32>
      %55 = tpu.matmul %52, %54, %cst_29 {dimension_numbers = #tpu.dot_dimension_numbers<[1], [0], [0], [1], [0, 0, 1, 1], [], []>} : vector<8x32xf32>, vector<32x32xf32>, vector<8x32xf32> -> vector<8x32xf32>
      %56 = arith.addf %51, %55 : vector<8x32xf32>
      %57 = vector.extract_strided_slice %46 {offsets = [2, 0], sizes = [8, 32], strides = [1, 1]} : vector<10x32xf32> to vector<8x32xf32>
      %c5 = arith.constant 5 : index
      %c0_30 = arith.constant 0 : index
      %c0_31 = arith.constant 0 : index
      %58 = vector.load %arg14[%c5, %c0_30, %c0_31] : memref<9x32x32xf32, #tpu.memory_space<vmem>>, vector<1x32x32xf32>
      %59 = vector.shape_cast %58 : vector<1x32x32xf32> to vector<32x32xf32>
      %cst_32 = arith.constant dense<0.000000e+00> : vector<8x32xf32>
      %60 = tpu.matmul %57, %59, %cst_32 {dimension_numbers = #tpu.dot_dimension_numbers<[1], [0], [0], [1], [0, 0, 1, 1], [], []>} : vector<8x32xf32>, vector<32x32xf32>, vector<8x32xf32> -> vector<8x32xf32>
      %61 = arith.addf %56, %60 : vector<8x32xf32>
      %c10_i32_33 = arith.constant 10 : i32
      %62 = arith.muli %2, %c10_i32_33 : i32
      %63 = arith.index_cast %62 : i32 to index
      %c0_34 = arith.constant 0 : index
      %64 = vector.load %arg21[%63, %c0_34] : memref<30x32xf32, #tpu.memory_space<vmem>>, vector<10x32xf32>
      %65 = vector.extract_strided_slice %64 {offsets = [0, 0], sizes = [8, 32], strides = [1, 1]} : vector<10x32xf32> to vector<8x32xf32>
      %c6 = arith.constant 6 : index
      %c0_35 = arith.constant 0 : index
      %c0_36 = arith.constant 0 : index
      %66 = vector.load %arg14[%c6, %c0_35, %c0_36] : memref<9x32x32xf32, #tpu.memory_space<vmem>>, vector<1x32x32xf32>
      %67 = vector.shape_cast %66 : vector<1x32x32xf32> to vector<32x32xf32>
      %cst_37 = arith.constant dense<0.000000e+00> : vector<8x32xf32>
      %68 = tpu.matmul %65, %67, %cst_37 {dimension_numbers = #tpu.dot_dimension_numbers<[1], [0], [0], [1], [0, 0, 1, 1], [], []>} : vector<8x32xf32>, vector<32x32xf32>, vector<8x32xf32> -> vector<8x32xf32>
      %69 = arith.addf %61, %68 : vector<8x32xf32>
      %70 = vector.extract_strided_slice %64 {offsets = [1, 0], sizes = [8, 32], strides = [1, 1]} : vector<10x32xf32> to vector<8x32xf32>
      %c7 = arith.constant 7 : index
      %c0_38 = arith.constant 0 : index
      %c0_39 = arith.constant 0 : index
      %71 = vector.load %arg14[%c7, %c0_38, %c0_39] : memref<9x32x32xf32, #tpu.memory_space<vmem>>, vector<1x32x32xf32>
      %72 = vector.shape_cast %71 : vector<1x32x32xf32> to vector<32x32xf32>
      %cst_40 = arith.constant dense<0.000000e+00> : vector<8x32xf32>
      %73 = tpu.matmul %70, %72, %cst_40 {dimension_numbers = #tpu.dot_dimension_numbers<[1], [0], [0], [1], [0, 0, 1, 1], [], []>} : vector<8x32xf32>, vector<32x32xf32>, vector<8x32xf32> -> vector<8x32xf32>
      %74 = arith.addf %69, %73 : vector<8x32xf32>
      %75 = vector.extract_strided_slice %64 {offsets = [2, 0], sizes = [8, 32], strides = [1, 1]} : vector<10x32xf32> to vector<8x32xf32>
      %c8 = arith.constant 8 : index
      %c0_41 = arith.constant 0 : index
      %c0_42 = arith.constant 0 : index
      %76 = vector.load %arg14[%c8, %c0_41, %c0_42] : memref<9x32x32xf32, #tpu.memory_space<vmem>>, vector<1x32x32xf32>
      %77 = vector.shape_cast %76 : vector<1x32x32xf32> to vector<32x32xf32>
      %cst_43 = arith.constant dense<0.000000e+00> : vector<8x32xf32>
      %78 = tpu.matmul %75, %77, %cst_43 {dimension_numbers = #tpu.dot_dimension_numbers<[1], [0], [0], [1], [0, 0, 1, 1], [], []>} : vector<8x32xf32>, vector<32x32xf32>, vector<8x32xf32> -> vector<8x32xf32>
      %79 = arith.addf %74, %78 : vector<8x32xf32>
      %c0_44 = arith.constant 0 : index
      %c0_45 = arith.constant 0 : index
      %80 = vector.load %arg15[%c0_44, %c0_45] : memref<1x32xf32, #tpu.memory_space<vmem>>, vector<1x32xf32>
      %81 = vector.broadcast %80 : vector<1x32xf32> to vector<8x32xf32>
      %82 = arith.addf %79, %81 : vector<8x32xf32>
      %cst_46 = arith.constant 0.000000e+00 : f32
      %83 = vector.broadcast %cst_46 : f32 to vector<8x32xf32>
      %84 = arith.maximumf %82, %83 : vector<8x32xf32>
      %c0_47 = arith.constant 0 : index
      %c0_48 = arith.constant 0 : index
      %85 = vector.load %arg16[%c0_47, %c0_48] : memref<32x32xf32, #tpu.memory_space<vmem>>, vector<32x32xf32>
      %cst_49 = arith.constant dense<0.000000e+00> : vector<8x32xf32>
      %86 = tpu.matmul %84, %85, %cst_49 {dimension_numbers = #tpu.dot_dimension_numbers<[1], [0], [0], [1], [0, 0, 1, 1], [], []>} : vector<8x32xf32>, vector<32x32xf32>, vector<8x32xf32> -> vector<8x32xf32>
      %c0_50 = arith.constant 0 : index
      %c0_51 = arith.constant 0 : index
      %87 = vector.load %arg17[%c0_50, %c0_51] : memref<1x32xf32, #tpu.memory_space<vmem>>, vector<1x32xf32>
      %88 = vector.broadcast %87 : vector<1x32xf32> to vector<8x32xf32>
      %89 = arith.addf %86, %88 : vector<8x32xf32>
      %c8_i32_52 = arith.constant 8 : i32
      %90 = arith.muli %4, %c8_i32_52 : i32
      %91 = tpu.assume_multiple %90, 8 : i32
      %92 = arith.index_cast %91 : i32 to index
      %c0_53 = arith.constant 0 : index
      %93 = vector.load %arg22[%92, %c0_53] : memref<24x32xf32, #tpu.memory_space<vmem>>, vector<8x32xf32>
      %94 = arith.addf %93, %89 : vector<8x32xf32>
      %c0_54 = arith.constant 0 : index
      %c0_55 = arith.constant 0 : index
      %c0_56 = arith.constant 0 : index
      %c0_57 = arith.constant 0 : index
      %95 = vector.load %arg19[%c0_54, %c0_55, %c0_56, %c0_57] : memref<1x1x8x32xf32, #tpu.memory_space<vmem>>, vector<1x1x8x32xf32>
      %96 = vector.shape_cast %95 : vector<1x1x8x32xf32> to vector<8x32xf32>
      %97 = vector.shape_cast %94 : vector<8x32xf32> to vector<1x1x8x32xf32>
      tpu.vector_store %arg19[%c0_54, %c0_55, %c0_56, %c0_57], %97 {strides = array<i32>} : memref<1x1x8x32xf32, #tpu.memory_space<vmem>>, vector<1x1x8x32xf32>,
    } else {
    }
    return
  }
  func.func @transform_0(%arg0: i32, %arg1: i32) -> (i32, i32, i32, i32) {
    %c7_i32 = arith.constant 7 : i32
    %0 = arith.minsi %arg1, %c7_i32 : i32
    %c0_i32 = arith.constant 0 : i32
    %c0_i32_0 = arith.constant 0 : i32
    %c0_i32_1 = arith.constant 0 : i32
    return %arg0, %0, %c0_i32, %c0_i32_0 : i32, i32, i32, i32
  }
  func.func @transform_1(%arg0: i32, %arg1: i32) -> (i32, i32, i32, i32) {
    %c1_i32 = arith.constant 1 : i32
    %0 = arith.subi %arg1, %c1_i32 : i32
    %c0_i32 = arith.constant 0 : i32
    %1 = arith.maxsi %0, %c0_i32 : i32
    %c7_i32 = arith.constant 7 : i32
    %2 = arith.minsi %1, %c7_i32 : i32
    %c0_i32_0 = arith.constant 0 : i32
    %c0_i32_1 = arith.constant 0 : i32
    %c0_i32_2 = arith.constant 0 : i32
    return %arg0, %2, %c0_i32_0, %c0_i32_1 : i32, i32, i32, i32
  }
  func.func @transform_2(%arg0: i32, %arg1: i32) -> (i32, i32) {
    %c0_i32 = arith.constant 0 : i32
    %c0_i32_0 = arith.constant 0 : i32
    %c0_i32_1 = arith.constant 0 : i32
    return %c0_i32, %c0_i32_0 : i32, i32
  }
  func.func @transform_3(%arg0: i32, %arg1: i32) -> (i32, i32) {
    %c0_i32 = arith.constant 0 : i32
    %c0_i32_0 = arith.constant 0 : i32
    %c0_i32_1 = arith.constant 0 : i32
    return %c0_i32, %c0_i32_0 : i32, i32
  }
  func.func @transform_4(%arg0: i32, %arg1: i32) -> (i32, i32) {
    %c0_i32 = arith.constant 0 : i32
    %c0_i32_0 = arith.constant 0 : i32
    %c0_i32_1 = arith.constant 0 : i32
    return %c0_i32, %c0_i32_0 : i32, i32
  }
  func.func @transform_5(%arg0: i32, %arg1: i32) -> (i32, i32, i32) {
    %c0_i32 = arith.constant 0 : i32
    %c0_i32_0 = arith.constant 0 : i32
    %c0_i32_1 = arith.constant 0 : i32
    %c0_i32_2 = arith.constant 0 : i32
    return %c0_i32, %c0_i32_0, %c0_i32_1 : i32, i32, i32
  }
  func.func @transform_6(%arg0: i32, %arg1: i32) -> (i32, i32) {
    %c0_i32 = arith.constant 0 : i32
    %c0_i32_0 = arith.constant 0 : i32
    %c0_i32_1 = arith.constant 0 : i32
    return %c0_i32, %c0_i32_0 : i32, i32
  }
  func.func @transform_7(%arg0: i32, %arg1: i32) -> (i32, i32) {
    %c0_i32 = arith.constant 0 : i32
    %c0_i32_0 = arith.constant 0 : i32
    %c0_i32_1 = arith.constant 0 : i32
    return %c0_i32, %c0_i32_0 : i32, i32
  }
  func.func @transform_8(%arg0: i32, %arg1: i32) -> (i32, i32) {
    %c0_i32 = arith.constant 0 : i32
    %c0_i32_0 = arith.constant 0 : i32
    %c0_i32_1 = arith.constant 0 : i32
    return %c0_i32, %c0_i32_0 : i32, i32
  }
  func.func @transform_9(%arg0: i32, %arg1: i32) -> (i32, i32) {
    %c0_i32 = arith.constant 0 : i32
    %c0_i32_0 = arith.constant 0 : i32
    %c0_i32_1 = arith.constant 0 : i32
    return %c0_i32, %c0_i32_0 : i32, i32
  }
  func.func @transform_10(%arg0: i32, %arg1: i32) -> (i32, i32) {
    %c0_i32 = arith.constant 0 : i32
    %c0_i32_0 = arith.constant 0 : i32
    %c0_i32_1 = arith.constant 0 : i32
    return %c0_i32, %c0_i32_0 : i32, i32
  }
  func.func @transform_11(%arg0: i32, %arg1: i32) -> (i32, i32) {
    %c0_i32 = arith.constant 0 : i32
    %c0_i32_0 = arith.constant 0 : i32
    %c0_i32_1 = arith.constant 0 : i32
    return %c0_i32, %c0_i32_0 : i32, i32
  }
  func.func @transform_12(%arg0: i32, %arg1: i32) -> (i32, i32, i32) {
    %c0_i32 = arith.constant 0 : i32
    %c0_i32_0 = arith.constant 0 : i32
    %c0_i32_1 = arith.constant 0 : i32
    %c0_i32_2 = arith.constant 0 : i32
    return %c0_i32, %c0_i32_0, %c0_i32_1 : i32, i32, i32
  }
  func.func @transform_13(%arg0: i32, %arg1: i32) -> (i32, i32) {
    %c0_i32 = arith.constant 0 : i32
    %c0_i32_0 = arith.constant 0 : i32
    %c0_i32_1 = arith.constant 0 : i32
    return %c0_i32, %c0_i32_0 : i32, i32
  }
  func.func @transform_14(%arg0: i32, %arg1: i32) -> (i32, i32) {
    %c0_i32 = arith.constant 0 : i32
    %c0_i32_0 = arith.constant 0 : i32
    %c0_i32_1 = arith.constant 0 : i32
    return %c0_i32, %c0_i32_0 : i32, i32
  }
  func.func @transform_15(%arg0: i32, %arg1: i32) -> (i32, i32) {
    %c0_i32 = arith.constant 0 : i32
    %c0_i32_0 = arith.constant 0 : i32
    %c0_i32_1 = arith.constant 0 : i32
    return %c0_i32, %c0_i32_0 : i32, i32
  }
  func.func @transform_16(%arg0: i32, %arg1: i32) -> (i32, i32, i32, i32) {
    %c1_i32 = arith.constant 1 : i32
    %0 = arith.subi %arg1, %c1_i32 : i32
    %c0_i32 = arith.constant 0 : i32
    %1 = arith.maxsi %0, %c0_i32 : i32
    %c7_i32 = arith.constant 7 : i32
    %2 = arith.minsi %1, %c7_i32 : i32
    %c0_i32_0 = arith.constant 0 : i32
    %c0_i32_1 = arith.constant 0 : i32
    %c0_i32_2 = arith.constant 0 : i32
    return %arg0, %2, %c0_i32_0, %c0_i32_1 : i32, i32, i32, i32
  }
  func.func @transform_17(%arg0: i32, %arg1: i32) -> (i32, i32, i32, i32) {
    %c2_i32 = arith.constant 2 : i32
    %0 = arith.subi %arg1, %c2_i32 : i32
    %c0_i32 = arith.constant 0 : i32
    %1 = arith.maxsi %0, %c0_i32 : i32
    %c7_i32 = arith.constant 7 : i32
    %2 = arith.minsi %1, %c7_i32 : i32
    %c0_i32_0 = arith.constant 0 : i32
    %c0_i32_1 = arith.constant 0 : i32
    %c0_i32_2 = arith.constant 0 : i32
    return %arg0, %2, %c0_i32_0, %c0_i32_1 : i32, i32, i32, i32
  }
}

</mosaic_0001>

<bundles_post_ra>
// kernel: tile.156
= control target key start
LH: loop header
LB: loop body
LE: loop exit
PB: predicated region body
PF: predicated region fallthrough
CT: control target
= control target key end

     0   :  { %s22_s0 = inlined_call_operand.vmem [shape: f32[4], index: 0, kind: input, shape index: {}]   ;;  %s23_s1 = inlined_call_operand.vmem [shape: f32[8,4], index: 1, kind: output, shape index: {}]  }
   0x1   :  { %v4_v0 = vld [vmem:[%s22_s0] ss:$0 sm:$0xff] }
   0x2   :  { %5 = vst [vmem:[%s23_s1] sm:$0xff] %v4_v0 }

// kernel: tile.160
= control target key start
LH: loop header
LB: loop body
LE: loop exit
PB: predicated region body
PF: predicated region fallthrough
CT: control target
= control target key end

     0   :  { %s67_s10 = smov 28   ;;  %s68_s11 = smov 20   ;;  %vm3_vm0 = vcmask 31744   ;;  %vm9_vm1 = vcmask 261344   ;;  %vm15_vm2 = vcmask 228544   ;;  %vm21_vm3 = vcmask 195744   ;;  %s111_s0 = inlined_call_operand.vmem [shape: f32[8,4], index: 0, kind: input, shape index: {}]   ;;  %s112_s1 = inlined_call_operand.vmem [shape: f32[1,32], index: 1, kind: output, shape index: {}]  }
   0x1   :  { %v53_v0 = vld [vmem:[%s111_s0 + $0x7] sm:$0x1]   ;;  %v55_v1 = vld [vmem:[%s111_s0 + $0x5] sm:$0x1]   ;;  %v54_v2 = vld [vmem:[%s111_s0 + $0x6] sm:$0x1]  }
   0x2   :  { %7 = vrot.lane.b32.xlu0 %v53_v0, %s67_s10  ;;  %19 = vrot.lane.b32.xlu1 %v55_v1, %s68_s11  ;;  %v56_v3 = vld [vmem:[%s111_s0 + $0x4] sm:$0x1]   ;;  %v2_v4 = vld [vmem:[%s111_s0] sm:$0x1]   ;;  %s69_s18 = smov 24   ;;  %s70_s19 = smov 16  }
   0x3   :  { %4 = vst.msk [vmem:[#allocation0] sm:$0x1] %vm3_vm0, %v2_v4   ;;  %v57_v5 = vld [vmem:[%s111_s0 + $0x3] sm:$0x1]   ;;  %v58_v6 = vld [vmem:[%s111_s0 + $0x2] sm:$0x1]  }
   0x4   :  { %s71_s24 = smov 12   ;;  %s72_s25 = smov 8   ;;  %v59_v7 = vld [vmem:[%s111_s0 + $0x1] sm:$0x1]   ;;  %vm27_vm4 = vcmask 162944   ;;  %vm33_vm5 = vcmask 130144  }
   0x5   :  { %s73_s0 = smov 4   ;;  %vm39_vm6 = vcmask 97344   ;;  %vm45_vm7 = vcmask 64544  }
   0x6   :  { %13 = vrot.lane.b32.xlu0 %v54_v2, %s69_s18  ;;  %25 = vrot.lane.b32.xlu1 %v56_v3, %s70_s19 }
   0xa   :  { %31 = vrot.lane.b32.xlu0 %v57_v5, %s71_s24  ;;  %37 = vrot.lane.b32.xlu1 %v58_v6, %s72_s25 }
   0xe   :  { %43 = vrot.lane.b32.xlu0 %v59_v7, %s73_s0 }
  0x74   :  { %v8_v8 = vpop.permute.xlu0 %7   ;;  %v20_v9 = vpop.permute.xlu1 %19  }
  0x75   :  { %10 = vst.msk [vmem:[#allocation0] sm:$0x1] %vm9_vm1, %v8_v8  }
  0x78   :  { %v14_v10 = vpop.permute.xlu0 %13   ;;  %v26_v11 = vpop.permute.xlu1 %25  }
  0x79   :  { %16 = vst.msk [vmem:[#allocation0] sm:$0x1] %vm15_vm2, %v14_v10  }
  0x7a   :  { %22 = vst.msk [vmem:[#allocation0] sm:$0x1] %vm21_vm3, %v20_v9  }
  0x7b   :  { %28 = vst.msk [vmem:[#allocation0] sm:$0x1] %vm27_vm4, %v26_v11  }
  0x7c   :  { %v32_v12 = vpop.permute.xlu0 %31   ;;  %v38_v13 = vpop.permute.xlu1 %37  }
  0x7d   :  { %34 = vst.msk [vmem:[#allocation0] sm:$0x1] %vm33_vm5, %v32_v12  }
  0x7e   :  { %40 = vst.msk [vmem:[#allocation0] sm:$0x1] %vm39_vm6, %v38_v13  }
  0x80   :  { %v44_v14 = vpop.permute.xlu0 %43  }
  0x81   :  { %46 = vst.msk [vmem:[#allocation0] sm:$0x1] %vm45_vm7, %v44_v14  }
  0x88   :  { %v50_v15 = vld [vmem:[#allocation0] sm:$0x1] }
  0x89   :  { %52 = vst [vmem:[%s112_s1] sm:$0x1] %v50_v15 }

</bundles_post_ra>
